<compile_context>
chip_gen: v5e
topology: v5e:2x2
jax: 0.10.0
libtpu: 0.0.40
codegen_flags: <defaults>
</compile_context>

<pallas_src>
import jax
import jax.numpy as jnp
from jax.experimental import pallas as pl
from jax.experimental.pallas import tpu as pltpu

EMBED_DIM = 25   # matches nn.Embedding(vocab, 25) in the reference module
TILE_N = 128     # rows per grid step (multiple of 8; sized for small ASTs)
LANES = 128      # lane width; vocab dim padded to a multiple of this


def _round_up(x, m):
    return ((x + m - 1) // m) * m


def _gather_kernel(idx_ref, table_ref, out_ref):
    """Row gather via lane-dense one-hot @ table on the MXU.

    The table already holds tanh(F.normalize(E)) (precomputed once in
    __init__) plus zero concat columns, so the kernel is gather + store.
    """
    idx = idx_ref[...]                                    # (TILE_N, 1) int32
    tn = idx.shape[0]
    v_pad = table_ref.shape[0]

    # One-hot selection: exact 0/1 values, lane-dense over the padded vocab.
    lane_ids = jax.lax.broadcasted_iota(jnp.int32, (tn, v_pad), 1)
    onehot = (lane_ids == idx).astype(jnp.float32)        # broadcast (TN, 1)

    # Single MXU contraction -> (TILE_N, output_dim).  Kept f32 for exactness.
    out_ref[...] = jnp.dot(onehot, table_ref[...],
                           preferred_element_type=jnp.float32)


def ast2vec_pallas(indices, table, out_dim):
    """indices: int [N]; table: float32 [V_pad, out_dim] (precomputed
    tanh(normalize(E)) with zero concat columns).  Returns float32 [N, out_dim].
    """
    n = int(indices.shape[0])
    v_pad, d_cols = int(table.shape[0]), int(table.shape[1])
    assert d_cols == out_dim

    # Bucket N to a multiple of TILE_N so varying tree sizes reuse one compile.
    # Padding rows use index 0 (padding_idx row -> zero output, sliced away).
    n_pad = max(TILE_N, _round_up(n, TILE_N))
    idx2d = jnp.zeros((n_pad, 1), jnp.int32).at[:n, 0].set(
        indices.astype(jnp.int32))

    out = pl.pallas_call(
        _gather_kernel,
        out_shape=jax.ShapeDtypeStruct((n_pad, d_cols), jnp.float32),
        grid=(n_pad // TILE_N,),
        in_specs=[
            # Indices tile: last dim 1 == full array dim -> legal block.
            pl.BlockSpec((TILE_N, 1), lambda i: (i, 0)),
            # Full table, constant index_map -> fetched once, VMEM-resident.
            pl.BlockSpec((v_pad, d_cols), lambda i: (0, 0)),
        ],
        # Narrow output block: last dim == output_dim == full array dim.
        out_specs=pl.BlockSpec((TILE_N, d_cols), lambda i: (i, 0)),
        compiler_params=pltpu.CompilerParams(
            dimension_semantics=("parallel",)),
    )(idx2d, table)
    # Row slice drops the padded (zero) rows; callers always see exactly N rows.
    return out[:n]


class Ast2VectorForPython:
    """JAX/Pallas port of the PyTorch module (deterministic synthetic weights)."""

    def __init__(self, input_dim, output_dim, rng_key):
        assert input_dim == EMBED_DIM, "module hard-codes a 25-dim embedding"
        assert output_dim >= input_dim, (
            "PyTorch reference would error for output_dim < input_dim "
            "(negative-size zeros in torch.cat)")
        # Synthetic vocab standing in for the pickled AST class list.
        # TODO(synk): real module loads the vocab from a pickle file on disk.
        python_ast_classes = [
            "Module", "FunctionDef", "Assign", "Name", "Call", "If", "For",
            "While", "Return", "BinOp", "Compare", "Expr", "Attribute",
            "Constant", "arguments", "arg", "Load", "Store", "Add", "Sub",
        ]
        self.keys = {"<unk>": 0}
        for k in python_ast_classes:
            self.keys[k] = len(self.keys)
        self.NULL_INDEX = self.keys["<unk>"]
        self.input_dim = input_dim
        self.output_dim = output_dim

        vocab_size = len(self.keys)
        # nn.Embedding default init ~ N(0,1); padding_idx=0 row is zero.
        w = jax.random.normal(rng_key, (vocab_size, EMBED_DIM), jnp.float32)
        w = w.at[0].set(0.0)
        self.raw_embedding = w   # kept for reference checking

        # Precompute tanh(F.normalize(w)) once: rsqrt(max(||w||^2, 1e-24)) is
        # exactly torch's x / max(||x||, 1e-12); the zero padding row maps to
        # zeros (0 * 1e12 = 0, tanh(0) = 0).
        sq = jnp.sum(w * w, axis=1, keepdims=True)
        w_act = jnp.tanh(w * jax.lax.rsqrt(jnp.maximum(sq, 1e-24)))

        # Pad vocab rows to a lane multiple (never selected, harmless) and
        # append the zero "concat" columns so the gather output is already
        # [N, output_dim].
        v_pad = max(LANES, _round_up(vocab_size, LANES))
        table = jnp.zeros((v_pad, output_dim), jnp.float32)
        self.table = table.at[:vocab_size, :EMBED_DIM].set(w_act)

    def _tokens_to_indices(self, tokens):
        return [self.keys.get(t, self.NULL_INDEX) for t in tokens]

    def forward(self, batch_tree):
        ast_x = batch_tree["x"]
        ast_y = batch_tree["y"]
        indices = jnp.asarray(self._tokens_to_indices(ast_x), dtype=jnp.int32)
        embedded = ast2vec_pallas(indices, self.table, self.output_dim)
        batch_tree["x"] = embedded
        batch_tree["label"] = self._tokens_to_indices(ast_y)  # python glue
        return embedded


if __name__ == "__main__":
    key = jax.random.PRNGKey(0)
    module = Ast2VectorForPython(input_dim=25, output_dim=32, rng_key=key)

    # Small deterministic "batch_tree": 16 AST node tokens (some unknown).
    tokens_x = [
        "Module", "FunctionDef", "Assign", "Name", "Call", "If", "For",
        "NotARealNode", "Return", "BinOp", "Compare", "Expr", "Attribute",
        "Constant", "AnotherUnknown", "Add",
    ]
    tokens_y = ["Call", "Name", "If", "Return"]
    batch_tree = {"x": tokens_x, "y": tokens_y}

    out = module.forward(batch_tree)
    out = jax.block_until_ready(out)

    assert out.shape == (len(tokens_x), 32)
    assert out.dtype == jnp.float32

    # Reference check in plain JAX from the RAW table:
    # gather + normalize(25-dim) + tanh + concat zeros.
    idx_ref = jnp.asarray(module._tokens_to_indices(tokens_x), jnp.int32)
    g = module.raw_embedding[idx_ref]
    nrm = jnp.sqrt(jnp.sum(g * g, axis=1, keepdims=True))
    ref = jnp.tanh(g / jnp.maximum(nrm, 1e-12))
    ref = jnp.concatenate(
        [ref, jnp.zeros((len(tokens_x), module.output_dim - EMBED_DIM),
                        jnp.float32)], axis=1)
    assert jnp.allclose(out, ref, atol=1e-5, rtol=1e-5)

    # Second call at a different tree size reuses the same bucketed compile.
    out2 = jax.block_until_ready(
        ast2vec_pallas(jnp.asarray([1, 2, 3, 0, 5], jnp.int32),
                       module.table, module.output_dim))
    assert out2.shape == (5, 32)

    # Larger input exercises a multi-step "parallel" grid (2 tiles of 128).
    big_idx = jnp.arange(250, dtype=jnp.int32) % len(module.keys)
    out3 = jax.block_until_ready(
        ast2vec_pallas(big_idx, module.table, module.output_dim))
    assert out3.shape == (250, 32)

    print("KERNEL_OK")
</pallas_src>

<mosaic_0001>
module attributes {stable_mosaic.version = 11 : i64} {
  func.func @_gather_kernel(%arg0: i32, %arg1: memref<128x1xi32, #tpu.memory_space<vmem>>, %arg2: memref<128x32xf32, #tpu.memory_space<vmem>>, %arg3: memref<128x32xf32, #tpu.memory_space<vmem>>) attributes {dimension_semantics = [#tpu.dimension_semantics<parallel>], iteration_bounds = array<i64: 1>, scalar_prefetch = 0 : i64, scratch_operands = 0 : i64, tpu.core_type = #tpu.core_type<tc>, window_params = [{transform_indices = @transform_0, window_bounds = array<i64: 128, 1>}, {pipeline_mode = #tpu.pipeline_mode<synchronous>, transform_indices = @transform_1, window_bounds = array<i64: 128, 32>}, {transform_indices = @transform_2, window_bounds = array<i64: 128, 32>}]} {
    %c0 = arith.constant 0 : index
    %c0_0 = arith.constant 0 : index
    %0 = vector.load %arg1[%c0, %c0_0] : memref<128x1xi32, #tpu.memory_space<vmem>>, vector<128x1xi32>
    %1 = tpu.iota {dimensions = array<i32: 1>} : vector<128x128xi32>
    %2 = vector.broadcast %0 : vector<128x1xi32> to vector<128x128xi32>
    %3 = arith.cmpi eq, %1, %2 : vector<128x128xi32>
    %4 = arith.extui %3 : vector<128x128xi1> to vector<128x128xi32>
    %5 = arith.sitofp %4 : vector<128x128xi32> to vector<128x128xf32>
    %c0_1 = arith.constant 0 : index
    %c0_2 = arith.constant 0 : index
    %6 = vector.load %arg2[%c0_1, %c0_2] : memref<128x32xf32, #tpu.memory_space<vmem>>, vector<128x32xf32>
    %cst = arith.constant dense<0.000000e+00> : vector<128x32xf32>
    %7 = tpu.matmul %5, %6, %cst {dimension_numbers = #tpu.dot_dimension_numbers<[1], [0], [0], [1], [0, 0, 1, 1], [], []>} : vector<128x128xf32>, vector<128x32xf32>, vector<128x32xf32> -> vector<128x32xf32>
    %c0_3 = arith.constant 0 : index
    %c0_4 = arith.constant 0 : index
    %8 = vector.load %arg3[%c0_3, %c0_4] : memref<128x32xf32, #tpu.memory_space<vmem>>, vector<128x32xf32>
    tpu.vector_store %arg3[%c0_3, %c0_4], %7 {strides = array<i32>} : memref<128x32xf32, #tpu.memory_space<vmem>>, vector<128x32xf32>,
    return
  }
  func.func @transform_0(%arg0: i32) -> (i32, i32) {
    %c0_i32 = arith.constant 0 : i32
    %c0_i32_0 = arith.constant 0 : i32
    return %arg0, %c0_i32 : i32, i32
  }
  func.func @transform_1(%arg0: i32) -> (i32, i32) {
    %c0_i32 = arith.constant 0 : i32
    %c0_i32_0 = arith.constant 0 : i32
    %c0_i32_1 = arith.constant 0 : i32
    return %c0_i32, %c0_i32_0 : i32, i32
  }
  func.func @transform_2(%arg0: i32) -> (i32, i32) {
    %c0_i32 = arith.constant 0 : i32
    %c0_i32_0 = arith.constant 0 : i32
    return %arg0, %c0_i32 : i32, i32
  }
}

</mosaic_0001>

<bundles_post_ra>
// kernel: tpu_custom_call.1
= control target key start
LH: loop header
LB: loop body
LE: loop exit
PB: predicated region body
PF: predicated region fallthrough
CT: control target
= control target key end

     0   :  { %v312_v0 = vmov 0   ;;  %v27_v34 = vlaneseq  ;;  %v313_v39 = vmov 1.0   ;;  %s489_s0 = inlined_call_operand.vmem [shape: s32[128,1], index: 0, kind: input, shape index: {}]   ;;  %s490_s1 = inlined_call_operand.vmem [shape: f32[128,32], index: 1, kind: input, shape index: {}]   ;;  %s491_s2 = inlined_call_operand.vmem [shape: f32[128,32], index: 2, kind: output, shape index: {}]  }
   0x1   :  { %311 = vset.pattern.permute.xlu2 %v312_v0  ;;  %310 = vset.pattern.permute.xlu1 %v312_v0  ;;  %v20_v1 = vld [vmem:[%s489_s0 + $0x48] sm:$0xff]  ;;  %v19_v2 = vld [vmem:[%s489_s0 + $0x40] sm:$0xff]  ;;  %v140_v7 = vld [vmem:[%s490_s1 + $0x78] sm:$0xff] }
   0x2   :  { %v11_v3 = vld [vmem:[%s489_s0] sm:$0xff]  ;;  %309 = vset.pattern.permute.xlu0 %v312_v0  ;;  %57 = vperm.xlu2 %311, %v20_v1   ;;  %v24_v4 = vld [vmem:[%s489_s0 + $0x68] sm:$0xff]  ;;  %v139_v8 = vld [vmem:[%s490_s1 + $0x70] sm:$0xff]  ;;  %v28_v35 = vand.u32 127, %v27_v34 }
   0x3   :  { %54 = vperm.xlu0 %309, %v19_v2   ;;  %30 = vperm.xlu1 %310, %v11_v3   ;;  %v23_v5 = vld [vmem:[%s489_s0 + $0x60] sm:$0xff]  ;;  %v138_v9 = vld [vmem:[%s490_s1 + $0x68] sm:$0xff]  ;;  %v21_v10 = vld [vmem:[%s489_s0 + $0x50] sm:$0xff] }
   0x4   :  { %v15_v6 = vld [vmem:[%s489_s0 + $0x20] sm:$0xff]  ;;  %260 = vmatpush.msra.mxu2 %v140_v7  ;;  %141 = vmatpush.msra.mxu0 %v140_v7  ;;  %v12_v11 = vld [vmem:[%s489_s0 + $0x8] sm:$0xff]  ;;  %v17_v13 = vld [vmem:[%s489_s0 + $0x30] sm:$0xff] }
   0x5   :  { %259 = vmatpush.msra.mxu1 %v140_v7  ;;  %261 = vmatpush.msra.mxu3 %v140_v7  ;;  %v16_v12 = vld [vmem:[%s489_s0 + $0x28] sm:$0xff]  ;;  %v25_v14 = vld [vmem:[%s489_s0 + $0x70] sm:$0xff]  ;;  %v14_v16 = vld [vmem:[%s489_s0 + $0x18] sm:$0xff] }
   0x6   :  { %263 = vmatpush.msra.mxu2 %v139_v8  ;;  %142 = vmatpush.msra.mxu0 %v139_v8  ;;  %v13_v15 = vld [vmem:[%s489_s0 + $0x10] sm:$0xff]  ;;  %v22_v17 = vld [vmem:[%s489_s0 + $0x58] sm:$0xff]  ;;  %v137_v20 = vld [vmem:[%s490_s1 + $0x60] sm:$0xff] }
   0x7   :  { %262 = vmatpush.msra.mxu1 %v139_v8  ;;  %264 = vmatpush.msra.mxu3 %v139_v8  ;;  %v26_v18 = vld [vmem:[%s489_s0 + $0x78] sm:$0xff]  ;;  %v135_v22 = vld [vmem:[%s490_s1 + $0x50] sm:$0xff]  ;;  %v134_v23 = vld [vmem:[%s490_s1 + $0x48] sm:$0xff] }
   0x8   :  { %266 = vmatpush.msra.mxu2 %v138_v9  ;;  %143 = vmatpush.msra.mxu0 %v138_v9  ;;  %v18_v19 = vld [vmem:[%s489_s0 + $0x38] sm:$0xff]  ;;  %v133_v24 = vld [vmem:[%s490_s1 + $0x40] sm:$0xff]  ;;  %v131_v26 = vld [vmem:[%s490_s1 + $0x30] sm:$0xff] }
   0x9   :  { %265 = vmatpush.msra.mxu1 %v138_v9  ;;  %267 = vmatpush.msra.mxu3 %v138_v9  ;;  %v136_v21 = vld [vmem:[%s490_s1 + $0x58] sm:$0xff]  ;;  %v130_v27 = vld [vmem:[%s490_s1 + $0x28] sm:$0xff]  ;;  %v129_v28 = vld [vmem:[%s490_s1 + $0x20] sm:$0xff] }
   0xa   :  { %69 = vperm.xlu2 %311, %v24_v4   ;;  %269 = vmatpush.msra.mxu2 %v137_v20  ;;  %v132_v25 = vld [vmem:[%s490_s1 + $0x38] sm:$0xff]  ;;  %v127_v30 = vld [vmem:[%s490_s1 + $0x10] sm:$0xff]  ;;  %v126_v31 = vld [vmem:[%s490_s1 + $0x8] sm:$0xff] }
   0xb   :  { %66 = vperm.xlu0 %309, %v23_v5   ;;  %42 = vperm.xlu1 %310, %v15_v6   ;;  %v128_v29 = vld [vmem:[%s490_s1 + $0x18] sm:$0xff]  ;;  %v125_v32 = vld [vmem:[%s490_s1] sm:$0xff] }
   0xc   :  { %144 = vmatpush.msra.mxu0 %v137_v20  ;;  %268 = vmatpush.msra.mxu1 %v137_v20 }
   0xd   :  { %270 = vmatpush.msra.mxu3 %v137_v20  ;;  %272 = vmatpush.msra.mxu2 %v136_v21 }
   0xe   :  { %145 = vmatpush.msra.mxu0 %v136_v21  ;;  %271 = vmatpush.msra.mxu1 %v136_v21 }
   0xf   :  { %273 = vmatpush.msra.mxu3 %v136_v21  ;;  %275 = vmatpush.msra.mxu2 %v135_v22 }
  0x10   :  { %146 = vmatpush.msra.mxu0 %v135_v22  ;;  %274 = vmatpush.msra.mxu1 %v135_v22 }
  0x11   :  { %276 = vmatpush.msra.mxu3 %v135_v22  ;;  %278 = vmatpush.msra.mxu2 %v134_v23 }
  0x12   :  { %60 = vperm.xlu2 %311, %v21_v10   ;;  %147 = vmatpush.msra.mxu0 %v134_v23 }
  0x13   :  { %33 = vperm.xlu0 %309, %v12_v11   ;;  %45 = vperm.xlu1 %310, %v16_v12  }
  0x14   :  { %277 = vmatpush.msra.mxu1 %v134_v23  ;;  %279 = vmatpush.msra.mxu3 %v134_v23 }
  0x15   :  { %281 = vmatpush.msra.mxu2 %v133_v24  ;;  %148 = vmatpush.msra.mxu0 %v133_v24 }
  0x16   :  { %280 = vmatpush.msra.mxu1 %v133_v24  ;;  %282 = vmatpush.msra.mxu3 %v133_v24 }
  0x17   :  { %284 = vmatpush.msra.mxu2 %v132_v25  ;;  %149 = vmatpush.msra.mxu0 %v132_v25 }
  0x18   :  { %283 = vmatpush.msra.mxu1 %v132_v25  ;;  %285 = vmatpush.msra.mxu3 %v132_v25 }
  0x19   :  { %287 = vmatpush.msra.mxu2 %v131_v26  ;;  %150 = vmatpush.msra.mxu0 %v131_v26 }
  0x1a   :  { %48 = vperm.xlu2 %311, %v17_v13   ;;  %286 = vmatpush.msra.mxu1 %v131_v26 }
  0x1b   :  { %72 = vperm.xlu0 %309, %v25_v14   ;;  %36 = vperm.xlu1 %310, %v13_v15  }
  0x1c   :  { %288 = vmatpush.msra.mxu3 %v131_v26  ;;  %290 = vmatpush.msra.mxu2 %v130_v27 }
  0x1d   :  { %151 = vmatpush.msra.mxu0 %v130_v27  ;;  %289 = vmatpush.msra.mxu1 %v130_v27 }
  0x1e   :  { %291 = vmatpush.msra.mxu3 %v130_v27  ;;  %293 = vmatpush.msra.mxu2 %v129_v28 }
  0x1f   :  { %152 = vmatpush.msra.mxu0 %v129_v28  ;;  %292 = vmatpush.msra.mxu1 %v129_v28 }
  0x20   :  { %294 = vmatpush.msra.mxu3 %v129_v28  ;;  %296 = vmatpush.msra.mxu2 %v128_v29 }
  0x21   :  { %153 = vmatpush.msra.mxu0 %v128_v29  ;;  %295 = vmatpush.msra.mxu1 %v128_v29 }
  0x22   :  { %39 = vperm.xlu2 %311, %v14_v16   ;;  %297 = vmatpush.msra.mxu3 %v128_v29 }
  0x23   :  { %63 = vperm.xlu0 %309, %v22_v17   ;;  %75 = vperm.xlu1 %310, %v26_v18  }
  0x24   :  { %299 = vmatpush.msra.mxu2 %v127_v30  ;;  %154 = vmatpush.msra.mxu0 %v127_v30 }
  0x25   :  { %298 = vmatpush.msra.mxu1 %v127_v30  ;;  %300 = vmatpush.msra.mxu3 %v127_v30 }
  0x26   :  { %302 = vmatpush.msra.mxu2 %v126_v31  ;;  %155 = vmatpush.msra.mxu0 %v126_v31 }
  0x27   :  { %301 = vmatpush.msra.mxu1 %v126_v31  ;;  %303 = vmatpush.msra.mxu3 %v126_v31 }
  0x28   :  { %305 = vmatpush.msra.mxu2 %v125_v32  ;;  %156 = vmatpush.msra.mxu0 %v125_v32 }
  0x29   :  { %304 = vmatpush.msra.mxu1 %v125_v32  ;;  %306 = vmatpush.msra.mxu3 %v125_v32 }
  0x2b   :  { %51 = vperm.xlu0 %309, %v18_v19  }
  0x5c   :  { %v58_v33 = vpop.permute.xlu2 %57 }
  0x5d   :  { %vm86_vm2 = vcmp.eq.s32.totalorder %v28_v35, %v58_v33 }
  0x64   :  { %v70_v36 = vpop.permute.xlu2 %69 }
  0x65   :  { %vm90_vm7 = vcmp.eq.s32.totalorder %v28_v35, %v70_v36 }
  0x6c   :  { %v61_v42 = vpop.permute.xlu2 %60 }
  0x6d   :  { %vm87_vm8 = vcmp.eq.s32.totalorder %v28_v35, %v61_v42 }
  0x74   :  { %v49_v45 = vpop.permute.xlu2 %48 }
  0x75   :  { %v55_v37 = vpop.permute.xlu0 %54  ;;  %v31_v38 = vpop.permute.xlu1 %30  ;;  %vm83_vm9 = vcmp.eq.s32.totalorder %v28_v35, %v49_v45 }
  0x76   :  { %vm85_vm0 = vcmp.eq.s32.totalorder %v28_v35, %v55_v37  ;;  %vm77_vm1 = vcmp.eq.s32.totalorder %v28_v35, %v31_v38 }
  0x77   :  { %251 = vmatmul.msk.f32.vlgmr.msra.gmra.mxu2 %vm85_vm0, %v313_v39  ;;  %243 = vmatmul.msk.f32.vlgmr.msra.gmra.mxu0 %vm77_vm1, %v313_v39  ;;  %vm206_vm0 = vcmask 261120  }
  0x7c   :  { %v40_v48 = vpop.permute.xlu2 %39 }
  0x7d   :  { %v67_v40 = vpop.permute.xlu0 %66  ;;  %v43_v41 = vpop.permute.xlu1 %42  ;;  %vm80_vm12 = vcmp.eq.s32.totalorder %v28_v35, %v40_v48 }
  0x7e   :  { %vm89_vm3 = vcmp.eq.s32.totalorder %v28_v35, %v67_v40  ;;  %vm81_vm4 = vcmp.eq.s32.totalorder %v28_v35, %v43_v41 }
  0x7f   :  { %247 = vmatmul.msk.f32.vlgmr.msra.gmra.mxu1 %vm81_vm4, %v313_v39  ;;  %252 = vmatmul.msk.f32.gmra.mxu2 %vm86_vm2, %v313_v39 }
  0x80   :  { %255 = vmatmul.msk.f32.vlgmr.msra.gmra.mxu3 %vm89_vm3, %v313_v39 }
  0x85   :  { %v34_v43 = vpop.permute.xlu0 %33  ;;  %v46_v44 = vpop.permute.xlu1 %45 }
  0x86   :  { %vm78_vm5 = vcmp.eq.s32.totalorder %v28_v35, %v34_v43  ;;  %vm82_vm6 = vcmp.eq.s32.totalorder %v28_v35, %v46_v44 }
  0x87   :  { %244 = vmatmul.msk.f32.gmra.mxu0 %vm78_vm5, %v313_v39  ;;  %248 = vmatmul.msk.f32.gmra.mxu1 %vm82_vm6, %v313_v39 }
  0x88   :  { %253 = vmatmul.msk.f32.gmra.mxu2 %vm87_vm8, %v313_v39  ;;  %256 = vmatmul.msk.f32.gmra.mxu3 %vm90_vm7, %v313_v39 }
  0x8d   :  { %v73_v46 = vpop.permute.xlu0 %72  ;;  %v37_v47 = vpop.permute.xlu1 %36 }
  0x8e   :  { %vm91_vm10 = vcmp.eq.s32.totalorder %v28_v35, %v73_v46  ;;  %vm79_vm11 = vcmp.eq.s32.totalorder %v28_v35, %v37_v47 }
  0x8f   :  { %245 = vmatmul.msk.f32.gmra.mxu0 %vm79_vm11, %v313_v39  ;;  %249 = vmatmul.msk.f32.gmra.mxu1 %vm83_vm9, %v313_v39 }
  0x90   :  { %257 = vmatmul.msk.f32.gmra.mxu3 %vm91_vm10, %v313_v39 }
  0x95   :  { %v64_v49 = vpop.permute.xlu0 %63  ;;  %v76_v50 = vpop.permute.xlu1 %75 }
  0x96   :  { %vm88_vm13 = vcmp.eq.s32.totalorder %v28_v35, %v64_v49  ;;  %vm92_vm14 = vcmp.eq.s32.totalorder %v28_v35, %v76_v50 }
  0x97   :  { %246 = vmatmul.msk.f32.gmra.mxu0 %vm80_vm12, %v313_v39  ;;  %254 = vmatmul.msk.f32.gmra.mxu2 %vm88_vm13, %v313_v39 }
  0x98   :  { %258 = vmatmul.msk.f32.gmra.mxu3 %vm92_vm14, %v313_v39 }
  0x9d   :  { %v52_v51 = vpop.permute.xlu0 %51 }
  0x9e   :  { %vm84_vm15 = vcmp.eq.s32.totalorder %v28_v35, %v52_v51 }
  0x9f   :  { %250 = vmatmul.msk.f32.gmra.mxu1 %vm84_vm15, %v313_v39 }
  0xf4   :  { %v158_v52 = vpop.f32.mrf.mxu0 }
  0xf5   :  { %207 = vst.msk [vmem:[%s491_s2] sm:$0xff] %vm206_vm0, %v158_v52 }
  0xfa   :  { %v182_v53 = vpop.f32.mrf.mxu2 }
  0xfb   :  { %215 = vst.msk [vmem:[%s491_s2 + $0x40] sm:$0xff] %vm206_vm0, %v182_v53 }
  0xfc   :  { %v170_v54 = vpop.f32.mrf.mxu1 }
  0xfd   :  { %211 = vst.msk [vmem:[%s491_s2 + $0x20] sm:$0xff] %vm206_vm0, %v170_v54 }
 0x102   :  { %v185_v55 = vpop.f32.mrf.mxu2 }
 0x103   :  { %216 = vst.msk [vmem:[%s491_s2 + $0x48] sm:$0xff] %vm206_vm0, %v185_v55  ;;  %v194_v56 = vpop.f32.mrf.mxu3 }
 0x104   :  { %219 = vst.msk [vmem:[%s491_s2 + $0x60] sm:$0xff] %vm206_vm0, %v194_v56  ;;  %v161_v57 = vpop.f32.mrf.mxu0  ;;  %v173_v58 = vpop.f32.mrf.mxu1 }
 0x105   :  { %208 = vst.msk [vmem:[%s491_s2 + $0x8] sm:$0xff] %vm206_vm0, %v161_v57 }
 0x106   :  { %212 = vst.msk [vmem:[%s491_s2 + $0x28] sm:$0xff] %vm206_vm0, %v173_v58 }
 0x10b   :  { %v188_v59 = vpop.f32.mrf.mxu2  ;;  %v197_v60 = vpop.f32.mrf.mxu3 }
 0x10c   :  { %217 = vst.msk [vmem:[%s491_s2 + $0x50] sm:$0xff] %vm206_vm0, %v188_v59  ;;  %v164_v61 = vpop.f32.mrf.mxu0  ;;  %v176_v62 = vpop.f32.mrf.mxu1 }
 0x10d   :  { %220 = vst.msk [vmem:[%s491_s2 + $0x68] sm:$0xff] %vm206_vm0, %v197_v60 }
 0x10e   :  { %209 = vst.msk [vmem:[%s491_s2 + $0x10] sm:$0xff] %vm206_vm0, %v164_v61 }
 0x10f   :  { %213 = vst.msk [vmem:[%s491_s2 + $0x30] sm:$0xff] %vm206_vm0, %v176_v62 }
 0x113   :  { %v200_v63 = vpop.f32.mrf.mxu3 }
 0x114   :  { %221 = vst.msk [vmem:[%s491_s2 + $0x70] sm:$0xff] %vm206_vm0, %v200_v63  ;;  %v167_v0 = vpop.f32.mrf.mxu0 }
 0x115   :  { %210 = vst.msk [vmem:[%s491_s2 + $0x18] sm:$0xff] %vm206_vm0, %v167_v0 }
 0x11a   :  { %v191_v1 = vpop.f32.mrf.mxu2 }
 0x11b   :  { %218 = vst.msk [vmem:[%s491_s2 + $0x58] sm:$0xff] %vm206_vm0, %v191_v1  ;;  %v203_v2 = vpop.f32.mrf.mxu3 }
 0x11c   :  { %222 = vst.msk [vmem:[%s491_s2 + $0x78] sm:$0xff] %vm206_vm0, %v203_v2  ;;  %v179_v3 = vpop.f32.mrf.mxu1 }
 0x11d   :  { %214 = vst.msk [vmem:[%s491_s2 + $0x38] sm:$0xff] %vm206_vm0, %v179_v3 }

</bundles_post_ra>
